<compile_context>
chip_gen: v7x
topology: tpu7x:2x2x1
jax: 0.10.0
libtpu: 0.0.40
codegen_flags: <defaults>
</compile_context>

<pallas_src>
import jax
import jax.numpy as jnp
from jax.experimental import pallas as pl
from jax.experimental.pallas import tpu as pltpu

H1_PAD = 512   # 400 -> 512
H2_PAD = 512   # 300 -> 512
TILE_B_MAX = 512


def _critic_kernel(x_ref, u_ref, w1x_ref, w1u_ref, b1_ref,
                   w2_ref, b2_ref, w3_ref, b3_ref, out_ref):
    # l1 + ReLU  (concat fused as two matmuls: [x,u] @ w1 == x @ w1[:S] + u @ w1[S:])
    h1 = (jnp.dot(x_ref[...], w1x_ref[...], preferred_element_type=jnp.float32)
          + jnp.dot(u_ref[...], w1u_ref[...], preferred_element_type=jnp.float32)
          + b1_ref[...])
    h1 = jnp.maximum(h1, 0.0)
    # l2 + ReLU
    h2 = jnp.dot(h1, w2_ref[...], preferred_element_type=jnp.float32) + b2_ref[...]
    h2 = jnp.maximum(h2, 0.0)
    # l3 (no activation): N=1 output column -> VPU multiply + lane reduction,
    # keeping the MXU free instead of running a 1/256-occupied systolic pass.
    out_ref[...] = jnp.sum(h2 * w3_ref[...], axis=-1, keepdims=True) + b3_ref[...]


def init_critic_params(key, state_dim, action_dim):
    """Deterministic init mimicking PyTorch nn.Linear default (U(-1/sqrt(fan_in), +1/sqrt(fan_in)))."""
    d_in = state_dim + action_dim
    dims = [(d_in, 400), (400, 300), (300, 1)]
    params = {}
    for i, (fan_in, fan_out) in enumerate(dims, start=1):
        key, kw, kb = jax.random.split(key, 3)
        bound = 1.0 / jnp.sqrt(jnp.float32(fan_in))
        params[f"w{i}"] = jax.random.uniform(
            kw, (fan_in, fan_out), jnp.float32, minval=-bound, maxval=bound)
        params[f"b{i}"] = jax.random.uniform(
            kb, (1, fan_out), jnp.float32, minval=-bound, maxval=bound)
    return params


def pad_critic_params(params, state_dim, action_dim):
    """One-time padding/splitting of the weights into MXU/lane-aligned shapes.

    Padded weight/bias entries are exactly zero, so the padded ReLU columns are
    exactly zero and downstream matmuls are unchanged.
    """
    w1, b1 = params["w1"], params["b1"]   # (S+A, 400), (1, 400)
    w2, b2 = params["w2"], params["b2"]   # (400, 300), (1, 300)
    w3, b3 = params["w3"], params["b3"]   # (300, 1),   (1, 1)
    h1, h2 = w1.shape[1], w2.shape[1]

    w1p = jnp.zeros((state_dim + action_dim, H1_PAD), jnp.float32).at[:, :h1].set(w1)
    return {
        "w1x": w1p[:state_dim],                                                 # (S, 512)
        "w1u": w1p[state_dim:],                                                 # (A, 512)
        "b1": jnp.zeros((1, H1_PAD), jnp.float32).at[:, :h1].set(b1),           # (1, 512)
        "w2": jnp.zeros((H1_PAD, H2_PAD), jnp.float32).at[:h1, :h2].set(w2),    # (512, 512)
        "b2": jnp.zeros((1, H2_PAD), jnp.float32).at[:, :h2].set(b2),           # (1, 512)
        "w3": jnp.zeros((1, H2_PAD), jnp.float32).at[:, :h2].set(w3.T),         # (1, 512) row
        "b3": b3.astype(jnp.float32),                                           # (1, 1)
    }


def critic_forward(x, u, p, tile_b_max=TILE_B_MAX):
    """Runs the fused 3-layer critic forward pass as a single Pallas kernel."""
    x = x.astype(jnp.float32)
    u = u.astype(jnp.float32)
    batch, state_dim = x.shape
    action_dim = u.shape[1]

    if batch <= tile_b_max:
        tile_b = batch          # single tile; full-extent block is always legal
    else:
        tile_b = tile_b_max     # multiple of 8; partial last tile is masked by Pallas
    grid = (pl.cdiv(batch, tile_b),)

    flops = 2 * batch * ((state_dim + action_dim) * H1_PAD + H1_PAD * H2_PAD + H2_PAD)
    bytes_accessed = 4 * (x.size + u.size + sum(int(v.size) for v in p.values()) + batch)

    def act_spec(d):
        return pl.BlockSpec((tile_b, d), lambda i: (i, 0))

    def const_spec(a):
        # Weights/biases: whole array, same block every grid step -> DMA'd once,
        # stays resident in VMEM while activation tiles stream.
        return pl.BlockSpec(a.shape, lambda i: (0, 0))

    return pl.pallas_call(
        _critic_kernel,
        out_shape=jax.ShapeDtypeStruct((batch, 1), jnp.float32),
        grid=grid,
        in_specs=[
            act_spec(state_dim),
            act_spec(action_dim),
            const_spec(p["w1x"]),
            const_spec(p["w1u"]),
            const_spec(p["b1"]),
            const_spec(p["w2"]),
            const_spec(p["b2"]),
            const_spec(p["w3"]),
            const_spec(p["b3"]),
        ],
        out_specs=pl.BlockSpec((tile_b, 1), lambda i: (i, 0)),
        compiler_params=pltpu.CompilerParams(
            dimension_semantics=("parallel",)),
        cost_estimate=pl.CostEstimate(
            flops=flops, transcendentals=0, bytes_accessed=bytes_accessed),
    )(x, u, p["w1x"], p["w1u"], p["b1"], p["w2"], p["b2"], p["w3"], p["b3"])


def critic_reference(x, u, params):
    """Pure-JAX reference (unpadded weights) for correctness checking."""
    xu = jnp.concatenate([x, u], axis=1).astype(jnp.float32)
    h1 = jnp.maximum(xu @ params["w1"] + params["b1"], 0.0)
    h2 = jnp.maximum(h1 @ params["w2"] + params["b2"], 0.0)
    return h2 @ params["w3"] + params["b3"]


if __name__ == "__main__":
    state_dim, action_dim, batch = 8, 4, 2

    key = jax.random.PRNGKey(0)
    key, kx, ku, kp = jax.random.split(key, 4)
    x = jax.random.normal(kx, (batch, state_dim), jnp.float32)
    u = jax.random.normal(ku, (batch, action_dim), jnp.float32)

    params = init_critic_params(kp, state_dim, action_dim)
    padded = pad_critic_params(params, state_dim, action_dim)

    q = critic_forward(x, u, padded)
    q = jax.block_until_ready(q)

    q_ref = critic_reference(x, u, params)
    assert q.shape == (batch, 1)
    assert jnp.allclose(q, q_ref, atol=1e-4, rtol=1e-4)

    print("KERNEL_OK")
</pallas_src>

<mosaic_0001>
module attributes {stable_mosaic.version = 11 : i64} {
  func.func @_critic_kernel(%arg0: i32, %arg1: memref<2x8xf32, #tpu.memory_space<vmem>>, %arg2: memref<2x4xf32, #tpu.memory_space<vmem>>, %arg3: memref<8x512xf32, #tpu.memory_space<vmem>>, %arg4: memref<4x512xf32, #tpu.memory_space<vmem>>, %arg5: memref<1x512xf32, #tpu.memory_space<vmem>>, %arg6: memref<512x512xf32, #tpu.memory_space<vmem>>, %arg7: memref<1x512xf32, #tpu.memory_space<vmem>>, %arg8: memref<1x512xf32, #tpu.memory_space<vmem>>, %arg9: memref<1x1xf32, #tpu.memory_space<vmem>>, %arg10: memref<2x1xf32, #tpu.memory_space<vmem>>) attributes {dimension_semantics = [#tpu.dimension_semantics<parallel>], iteration_bounds = array<i64: 1>, scalar_prefetch = 0 : i64, scratch_operands = 0 : i64, tpu.core_type = #tpu.core_type<tc>, window_params = [{transform_indices = @transform_0, window_bounds = array<i64: 2, 8>}, {transform_indices = @transform_1, window_bounds = array<i64: 2, 4>}, {pipeline_mode = #tpu.pipeline_mode<synchronous>, transform_indices = @transform_2, window_bounds = array<i64: 8, 512>}, {pipeline_mode = #tpu.pipeline_mode<synchronous>, transform_indices = @transform_3, window_bounds = array<i64: 4, 512>}, {pipeline_mode = #tpu.pipeline_mode<synchronous>, transform_indices = @transform_4, window_bounds = array<i64: 1, 512>}, {pipeline_mode = #tpu.pipeline_mode<synchronous>, transform_indices = @transform_5, window_bounds = array<i64: 512, 512>}, {pipeline_mode = #tpu.pipeline_mode<synchronous>, transform_indices = @transform_6, window_bounds = array<i64: 1, 512>}, {pipeline_mode = #tpu.pipeline_mode<synchronous>, transform_indices = @transform_7, window_bounds = array<i64: 1, 512>}, {pipeline_mode = #tpu.pipeline_mode<synchronous>, transform_indices = @transform_8, window_bounds = array<i64: 1, 1>}, {transform_indices = @transform_9, window_bounds = array<i64: 2, 1>}]} {
    %c0 = arith.constant 0 : index
    %c0_0 = arith.constant 0 : index
    %0 = vector.load %arg1[%c0, %c0_0] : memref<2x8xf32, #tpu.memory_space<vmem>>, vector<2x8xf32>
    %c0_1 = arith.constant 0 : index
    %c0_2 = arith.constant 0 : index
    %1 = vector.load %arg3[%c0_1, %c0_2] : memref<8x512xf32, #tpu.memory_space<vmem>>, vector<8x512xf32>
    %cst = arith.constant dense<0.000000e+00> : vector<2x512xf32>
    %2 = tpu.matmul %0, %1, %cst {dimension_numbers = #tpu.dot_dimension_numbers<[1], [0], [0], [1], [0, 0, 1, 1], [], []>} : vector<2x8xf32>, vector<8x512xf32>, vector<2x512xf32> -> vector<2x512xf32>
    %c0_3 = arith.constant 0 : index
    %c0_4 = arith.constant 0 : index
    %3 = vector.load %arg2[%c0_3, %c0_4] : memref<2x4xf32, #tpu.memory_space<vmem>>, vector<2x4xf32>
    %c0_5 = arith.constant 0 : index
    %c0_6 = arith.constant 0 : index
    %4 = vector.load %arg4[%c0_5, %c0_6] : memref<4x512xf32, #tpu.memory_space<vmem>>, vector<4x512xf32>
    %cst_7 = arith.constant dense<0.000000e+00> : vector<2x512xf32>
    %5 = tpu.matmul %3, %4, %cst_7 {dimension_numbers = #tpu.dot_dimension_numbers<[1], [0], [0], [1], [0, 0, 1, 1], [], []>} : vector<2x4xf32>, vector<4x512xf32>, vector<2x512xf32> -> vector<2x512xf32>
    %6 = arith.addf %2, %5 : vector<2x512xf32>
    %c0_8 = arith.constant 0 : index
    %c0_9 = arith.constant 0 : index
    %7 = vector.load %arg5[%c0_8, %c0_9] : memref<1x512xf32, #tpu.memory_space<vmem>>, vector<1x512xf32>
    %8 = vector.broadcast %7 : vector<1x512xf32> to vector<2x512xf32>
    %9 = arith.addf %6, %8 : vector<2x512xf32>
    %cst_10 = arith.constant 0.000000e+00 : f32
    %10 = vector.broadcast %cst_10 : f32 to vector<2x512xf32>
    %11 = arith.maximumf %9, %10 : vector<2x512xf32>
    %c0_11 = arith.constant 0 : index
    %c0_12 = arith.constant 0 : index
    %12 = vector.load %arg6[%c0_11, %c0_12] : memref<512x512xf32, #tpu.memory_space<vmem>>, vector<512x512xf32>
    %cst_13 = arith.constant dense<0.000000e+00> : vector<2x512xf32>
    %13 = tpu.matmul %11, %12, %cst_13 {dimension_numbers = #tpu.dot_dimension_numbers<[1], [0], [0], [1], [0, 0, 1, 1], [], []>} : vector<2x512xf32>, vector<512x512xf32>, vector<2x512xf32> -> vector<2x512xf32>
    %c0_14 = arith.constant 0 : index
    %c0_15 = arith.constant 0 : index
    %14 = vector.load %arg7[%c0_14, %c0_15] : memref<1x512xf32, #tpu.memory_space<vmem>>, vector<1x512xf32>
    %15 = vector.broadcast %14 : vector<1x512xf32> to vector<2x512xf32>
    %16 = arith.addf %13, %15 : vector<2x512xf32>
    %cst_16 = arith.constant 0.000000e+00 : f32
    %17 = vector.broadcast %cst_16 : f32 to vector<2x512xf32>
    %18 = arith.maximumf %16, %17 : vector<2x512xf32>
    %c0_17 = arith.constant 0 : index
    %c0_18 = arith.constant 0 : index
    %19 = vector.load %arg8[%c0_17, %c0_18] : memref<1x512xf32, #tpu.memory_space<vmem>>, vector<1x512xf32>
    %20 = vector.broadcast %19 : vector<1x512xf32> to vector<2x512xf32>
    %21 = arith.mulf %18, %20 : vector<2x512xf32>
    %cst_19 = arith.constant dense<0.000000e+00> : vector<2xf32>
    %22 = vector.multi_reduction <add>, %21, %cst_19 [1] : vector<2x512xf32> to vector<2xf32>
    %23 = vector.shape_cast %22 : vector<2xf32> to vector<2x1xf32>
    %c0_20 = arith.constant 0 : index
    %c0_21 = arith.constant 0 : index
    %24 = vector.load %arg9[%c0_20, %c0_21] : memref<1x1xf32, #tpu.memory_space<vmem>>, vector<1x1xf32>
    %25 = vector.broadcast %24 : vector<1x1xf32> to vector<2x1xf32>
    %26 = arith.addf %23, %25 : vector<2x1xf32>
    %c0_22 = arith.constant 0 : index
    %c0_23 = arith.constant 0 : index
    %27 = vector.load %arg10[%c0_22, %c0_23] : memref<2x1xf32, #tpu.memory_space<vmem>>, vector<2x1xf32>
    tpu.vector_store %arg10[%c0_22, %c0_23], %26 {strides = array<i32>} : memref<2x1xf32, #tpu.memory_space<vmem>>, vector<2x1xf32>,
    return
  }
  func.func @transform_0(%arg0: i32) -> (i32, i32) {
    %c0_i32 = arith.constant 0 : i32
    %c0_i32_0 = arith.constant 0 : i32
    return %arg0, %c0_i32 : i32, i32
  }
  func.func @transform_1(%arg0: i32) -> (i32, i32) {
    %c0_i32 = arith.constant 0 : i32
    %c0_i32_0 = arith.constant 0 : i32
    return %arg0, %c0_i32 : i32, i32
  }
  func.func @transform_2(%arg0: i32) -> (i32, i32) {
    %c0_i32 = arith.constant 0 : i32
    %c0_i32_0 = arith.constant 0 : i32
    %c0_i32_1 = arith.constant 0 : i32
    return %c0_i32, %c0_i32_0 : i32, i32
  }
  func.func @transform_3(%arg0: i32) -> (i32, i32) {
    %c0_i32 = arith.constant 0 : i32
    %c0_i32_0 = arith.constant 0 : i32
    %c0_i32_1 = arith.constant 0 : i32
    return %c0_i32, %c0_i32_0 : i32, i32
  }
  func.func @transform_4(%arg0: i32) -> (i32, i32) {
    %c0_i32 = arith.constant 0 : i32
    %c0_i32_0 = arith.constant 0 : i32
    %c0_i32_1 = arith.constant 0 : i32
    return %c0_i32, %c0_i32_0 : i32, i32
  }
  func.func @transform_5(%arg0: i32) -> (i32, i32) {
    %c0_i32 = arith.constant 0 : i32
    %c0_i32_0 = arith.constant 0 : i32
    %c0_i32_1 = arith.constant 0 : i32
    return %c0_i32, %c0_i32_0 : i32, i32
  }
  func.func @transform_6(%arg0: i32) -> (i32, i32) {
    %c0_i32 = arith.constant 0 : i32
    %c0_i32_0 = arith.constant 0 : i32
    %c0_i32_1 = arith.constant 0 : i32
    return %c0_i32, %c0_i32_0 : i32, i32
  }
  func.func @transform_7(%arg0: i32) -> (i32, i32) {
    %c0_i32 = arith.constant 0 : i32
    %c0_i32_0 = arith.constant 0 : i32
    %c0_i32_1 = arith.constant 0 : i32
    return %c0_i32, %c0_i32_0 : i32, i32
  }
  func.func @transform_8(%arg0: i32) -> (i32, i32) {
    %c0_i32 = arith.constant 0 : i32
    %c0_i32_0 = arith.constant 0 : i32
    %c0_i32_1 = arith.constant 0 : i32
    return %c0_i32, %c0_i32_0 : i32, i32
  }
  func.func @transform_9(%arg0: i32) -> (i32, i32) {
    %c0_i32 = arith.constant 0 : i32
    %c0_i32_0 = arith.constant 0 : i32
    return %arg0, %c0_i32 : i32, i32
  }
}

</mosaic_0001>

<bundles_post_ra>
// kernel: tpu_custom_call.1
= control target key start
LH: loop header
LB: loop body
LE: loop exit
PB: predicated region body
PF: predicated region fallthrough
CT: control target
= control target key end

     0   :  { %s1586_s0 = inlined_call_operand.vmem [shape: f32[2,8], index: 0, kind: input, shape index: {}]   ;;  %s1587_s1 = inlined_call_operand.hbm [shape: f32[2,4], index: 1, kind: input, shape index: {}]   ;;  %s1588_s2 = inlined_call_operand.hbm [shape: f32[8,512], index: 2, kind: input, shape index: {}]   ;;  %s1589_s3 = inlined_call_operand.hbm [shape: f32[4,512], index: 3, kind: input, shape index: {}]   ;;  %s1590_s4 = inlined_call_operand.vmem [shape: f32[1,512], index: 4, kind: input, shape index: {}]   ;;  %s1591_s5 = inlined_call_operand.hbm [shape: f32[512,512], index: 5, kind: input, shape index: {}]   ;;  %s1592_s6 = inlined_call_operand.vmem [shape: f32[1,512], index: 6, kind: input, shape index: {}]   ;;  %s1593_s7 = inlined_call_operand.vmem [shape: f32[1,512], index: 7, kind: input, shape index: {}]   ;;  %s1594_s8 = inlined_call_operand.<no memory space> [shape: f32[1,1], index: 8, kind: input, shape index: {}]   ;;  %s1595_s9 = inlined_call_operand.vmem [shape: f32[2,1], index: 9, kind: output, shape index: {}]  }
   0x1   :  { %v14_v0 = vstv %s1594_s8 }
   0x2   :  { %15 = vst [vmem:[#allocation2] sm:$0x1] %v14_v0 }
   0x3   :  { %16 = vsyncpa [#allocation4], 0 }
   0x4   :  { %17 = vsyncpa [#allocation6], 0 }
   0x5   :  { %18 = vsyncpa [#allocation9], 0  ;;  %s1425_s11 = smov [#allocation5]   ;;  %s1426_s13 = smov [#allocation3]  }
   0x6   :  { %s37_s12 = sshll.u32 %s1425_s11, 4  ;;  %s27_s14 = sshll.u32 %s1426_s13, 4  ;;  %s38_s12 = int_to_ptr.vmem [resolvable:$true] %s37_s12  ;;  %s28_s14 = int_to_ptr.vmem [resolvable:$true] %s27_s14 }
   0x7   :  { %s1331_s17 = scalar_lea.hbm %s1588_s2, 512 }
   0x8   :  { %p1332_p0 = scmp.ne.s32.totalorder %s1588_s2, %s1331_s17  ;;  %p1335_p1 = scmp.lt.u32.totalorder %s1331_s17, %s1588_s2 }
   0xa   :  { %p1337_p2 = pnand %p1335_p1, %p1332_p0 }
   0xc   :  { %1340 = shalt.err (!%p1337_p2)
}
   0xd   :  { %s1341_s21 = scalar_lea.vmem %s38_s12, 512  ;;  %p1346_p4 = scmp.lt.s32.totalorder %s38_s12, %s38_s12 }
   0xe   :  { %p1342_p3 = scmp.ne.s32.totalorder %s38_s12, %s1341_s21  ;;  %p1347_p5 = scmp.lt.s32.totalorder %s1341_s21, %s1341_s21 }
  0x10   :  { %p1348_p6 = por %p1347_p5, %p1346_p4 }
  0x12   :  { %p1349_p7 = pnand %p1348_p6, %p1342_p3 }
  0x14   :  { %1352 = shalt.err (!%p1349_p7)
}
  0x15   :  { %40 = dma.hbm_to_vmem [thread:$0]  %s1588_s2, 512, %s38_s12, [#allocation6]  }
  0x16   :  { %s1353_s26 = scalar_lea.hbm %s1587_s1, 32 }
  0x17   :  { %p1354_p8 = scmp.ne.s32.totalorder %s1587_s1, %s1353_s26  ;;  %p1357_p9 = scmp.lt.u32.totalorder %s1353_s26, %s1587_s1 }
  0x19   :  { %p1359_p10 = pnand %p1357_p9, %p1354_p8 }
  0x1b   :  { %1362 = shalt.err (!%p1359_p10)
}
  0x1c   :  { %s1363_s10 = scalar_lea.vmem %s28_s14, 32  ;;  %p1368_p12 = scmp.lt.s32.totalorder %s28_s14, %s28_s14 }
  0x1d   :  { %p1364_p11 = scmp.ne.s32.totalorder %s28_s14, %s1363_s10  ;;  %p1369_p13 = scmp.lt.s32.totalorder %s1363_s10, %s1363_s10 }
  0x1f   :  { %p1370_p0 = por %p1369_p13, %p1368_p12 }
  0x21   :  { %p1371_p1 = pnand %p1370_p0, %p1364_p11 }
  0x23   :  { %1374 = shalt.err (!%p1371_p1)
}
  0x24   :  { %30 = dma.hbm_to_vmem [thread:$0]  %s1587_s1, 32, %s28_s14, [#allocation4]  }
  0x25   :  { %s1427_s12 = smov [#allocation7]   ;;  %s1428_s15 = smov [#allocation8]  }
  0x26   :  { %s47_s13 = sshll.u32 %s1427_s12, 4  ;;  %s58_s16 = sshll.u32 %s1428_s15, 4  ;;  %s48_s13 = int_to_ptr.vmem [resolvable:$true] %s47_s13  ;;  %s1509_s16 = int_to_ptr.vmem [resolvable:$true] %s58_s16 }
  0x27   :  { %s1375_s19 = scalar_lea.hbm %s1589_s3, 256 }
  0x28   :  { %p1376_p2 = scmp.ne.s32.totalorder %s1589_s3, %s1375_s19  ;;  %p1379_p3 = scmp.lt.u32.totalorder %s1375_s19, %s1589_s3 }
  0x2a   :  { %p1381_p4 = pnand %p1379_p3, %p1376_p2 }
  0x2c   :  { %1384 = shalt.err (!%p1381_p4)
}
  0x2d   :  { %s1385_s1 = scalar_lea.vmem %s48_s13, 256  ;;  %p1390_p6 = scmp.lt.s32.totalorder %s48_s13, %s48_s13 }
  0x2e   :  { %p1386_p5 = scmp.ne.s32.totalorder %s48_s13, %s1385_s1  ;;  %p1391_p7 = scmp.lt.s32.totalorder %s1385_s1, %s1385_s1 }
  0x30   :  { %p1392_p8 = por %p1391_p7, %p1390_p6 }
  0x32   :  { %p1393_p9 = pnand %p1392_p8, %p1386_p5 }
  0x34   :  { %1396 = shalt.err (!%p1393_p9)
}
  0x35   :  { %50 = dma.hbm_to_vmem [thread:$0]  %s1589_s3, 256, %s48_s13, [#allocation6]  }
  0x36   :  { %s1397_s26 = scalar_lea.hbm %s1591_s5, 32768 }
  0x37   :  { %p1398_p10 = scmp.ne.s32.totalorder %s1591_s5, %s1397_s26  ;;  %p1401_p11 = scmp.lt.u32.totalorder %s1397_s26, %s1591_s5 }
  0x39   :  { %p1403_p12 = pnand %p1401_p11, %p1398_p10 }
  0x3b   :  { %1406 = shalt.err (!%p1403_p12)
}
  0x3c   :  { %s1407_s10 = scalar_lea.vmem %s1509_s16, 32768  ;;  %p1412_p0 = scmp.lt.s32.totalorder %s1509_s16, %s1509_s16 }
  0x3d   :  { %p1408_p13 = scmp.ne.s32.totalorder %s1509_s16, %s1407_s10  ;;  %p1413_p1 = scmp.lt.s32.totalorder %s1407_s10, %s1407_s10 }
  0x3f   :  { %p1414_p2 = por %p1413_p1, %p1412_p0 }
  0x41   :  { %p1415_p3 = pnand %p1414_p2, %p1408_p13 }
  0x43   :  { %1418 = shalt.err (!%p1415_p3)
}
  0x44   :  { %s1429_s3 = smov 512   ;;  %s1430_s2 = smov 32  }
  0x45   :  { %64 = dma.hbm_to_vmem [thread:$0]  %s1591_s5, 32768, %s1509_s16, [#allocation9], %s1429_s3, %s1429_s3, %s1430_s2  }
  0x46   :  { %1419 = dma.done.wait [#allocation4], 32  }
  0x47   :  { %1420 = vsyncadd [#allocation4], 4294967264 }
  0x48   :  { %1421 = dma.done.wait [#allocation6], 768  }
  0x49   :  { %1422 = vsyncadd [#allocation6], 4294966528 }
  0x4a   :  { %1423 = dma.done.wait [#allocation9], 32768  }
  0x4b   :  { %1424 = vsyncadd [#allocation9], 4294934528  ;;  %v1431_v1 = vmov 0.0   ;;  %v89_v2 = vld [vmem:[#allocation7] sm:$0xff]  ;;  %vm99_vm0 = vcmask 1043456   ;;  %v90_v5 = vld [vmem:[#allocation7 + $0x8] sm:$0xff] }
  0x4c   :  { %172 = vmatprep.mubr.f32.mxu0 %v1431_v1  ;;  %243 = vmatprep.mubr.f32.mxu1 %v1431_v1  ;;  %v93_v3 = vcombine.high %v89_v2, %v89_v2  ;;  %v88_v4 = vld [vmem:[#allocation3] sm:$0x3]  ;;  %vm95_vm1 = vcmask 31744   ;;  %v85_v6 = vld [vmem:[#allocation5 + $0x8] sm:$0xff]  ;;  %v84_v7 = vld [vmem:[#allocation5] sm:$0xff]  ;;  %v94_v8 = vcombine.high %v90_v5, %v90_v5  ;;  %vm250_vm2 = vcmask 64512  }
  0x4d   :  { %v427_v9 = vld [vmem:[#allocation8 + $0x8] sm:$0xff]  ;;  %v429_v11 = vld [vmem:[#allocation8 + $0x18] sm:$0xff]  ;;  %v86_v15 = vld [vmem:[#allocation5 + $0x10] sm:$0xff]  ;;  %vm1018_vm3 = vcmask 1041408   ;;  %vm1036_vm4 = vcmask 1024  }
  0x4e   :  { %1045 = vmatprep.subr.msk.mxu0 %vm99_vm0, %v93_v3  ;;  %v431_v10 = vld [vmem:[#allocation8 + $0x28] sm:$0xff]  ;;  %v433_v12 = vld [vmem:[#allocation8 + $0x38] sm:$0xff]  ;;  %1048 = vmatprep.subr.msk.mxu1 %vm99_vm0, %v94_v8  ;;  %v426_v17 = vld [vmem:[#allocation8] sm:$0xff] }
  0x4f   :  { %1046 = vmatpush1.msk.msra.mxu0 %vm99_vm0, %v89_v2  ;;  %v1054_v13 = vpack.c.bf16 %v431_v10, %v427_v9  ;;  %v87_v14 = vld [vmem:[#allocation5 + $0x18] sm:$0xff]  ;;  %v1182_v16 = vpack.c.bf16 %v433_v12, %v429_v11  ;;  %1049 = vmatpush1.msk.msra.mxu1 %vm99_vm0, %v90_v5  ;;  %v430_v18 = vld [vmem:[#allocation8 + $0x20] sm:$0xff]  ;;  %v428_v23 = vld [vmem:[#allocation8 + $0x10] sm:$0xff] }
  0x50   :  { %1047 = vmatmul.mubr.msk.f32.vlgmr.msra.gmra.mrb[0].mxu0 %vm95_vm1, %v88_v4  ;;  %254 = vmatprep.subr.mxu0 %v85_v6  ;;  %v435_v19 = vld [vmem:[#allocation8 + $0x48] sm:$0xff]  ;;  %v1056_v22 = vpack.c.bf16 %v430_v18, %v426_v17  ;;  %v432_v24 = vld [vmem:[#allocation8 + $0x30] sm:$0xff]  ;;  %v437_v25 = vld [vmem:[#allocation8 + $0x58] sm:$0xff] }
  0x51   :  { %255 = vmatpush1.msra.mxu0 %v84_v7  ;;  %318 = vmatprep.mubr.f32.mxu0 %v1431_v1  ;;  %v439_v20 = vld [vmem:[#allocation8 + $0x68] sm:$0xff]  ;;  %v441_v27 = vld [vmem:[#allocation8 + $0x78] sm:$0xff]  ;;  %v434_v28 = vld [vmem:[#allocation8 + $0x40] sm:$0xff]  ;;  %v1184_v32 = vpack.c.bf16 %v432_v24, %v428_v23 }
  0x52   :  { %1055 = vmatprep.subr.bf16.mxu0 %v1054_v13  ;;  %1050 = vmatmul.mubr.msk.f32.vlgmr.msra.gmra.mrb[0].mxu1 %vm95_vm1, %v88_v4  ;;  %v83_v21 = vld [vmem:[%s1586_s0] sm:$0x3]  ;;  %v1058_v26 = vpack.c.bf16 %v439_v20, %v435_v19  ;;  %v438_v29 = vld [vmem:[#allocation8 + $0x60] sm:$0xff]  ;;  %v1186_v33 = vpack.c.bf16 %v441_v27, %v437_v25  ;;  %v436_v35 = vld [vmem:[#allocation8 + $0x50] sm:$0xff] }
  0x53   :  { %325 = vmatprep.subr.mxu1 %v87_v14  ;;  %389 = vmatprep.mubr.f32.mxu1 %v1431_v1  ;;  %v443_v30 = vld [vmem:[#allocation8 + $0x88] sm:$0xff]  ;;  %v1060_v34 = vpack.c.bf16 %v438_v29, %v434_v28  ;;  %v440_v36 = vld [vmem:[#allocation8 + $0x70] sm:$0xff]  ;;  %v445_v37 = vld [vmem:[#allocation8 + $0x98] sm:$0xff] }
  0x54   :  { %326 = vmatpush1.msra.mxu1 %v86_v15  ;;  %v447_v31 = vld [vmem:[#allocation8 + $0xa8] sm:$0xff]  ;;  %v449_v39 = vld [vmem:[#allocation8 + $0xb8] sm:$0xff]  ;;  %v442_v40 = vld [vmem:[#allocation8 + $0x80] sm:$0xff]  ;;  %v1188_v44 = vpack.c.bf16 %v440_v36, %v436_v35 }
  0x55   :  { %1183 = vmatprep.subr.bf16.mxu1 %v1182_v16  ;;  %v1062_v38 = vpack.c.bf16 %v447_v31, %v443_v30  ;;  %v446_v41 = vld [vmem:[#allocation8 + $0xa0] sm:$0xff]  ;;  %v451_v42 = vld [vmem:[#allocation8 + $0xc8] sm:$0xff]  ;;  %v1190_v45 = vpack.c.bf16 %v449_v39, %v445_v37  ;;  %v444_v47 = vld [vmem:[#allocation8 + $0x90] sm:$0xff] }
  0x56   :  { %v455_v43 = vld [vmem:[#allocation8 + $0xe8] sm:$0xff]  ;;  %v1064_v46 = vpack.c.bf16 %v446_v41, %v442_v40  ;;  %v448_v48 = vld [vmem:[#allocation8 + $0xb0] sm:$0xff]  ;;  %v453_v49 = vld [vmem:[#allocation8 + $0xd8] sm:$0xff] }
  0x57   :  { %v1066_v50 = vpack.c.bf16 %v455_v43, %v451_v42  ;;  %v457_v51 = vld [vmem:[#allocation8 + $0xf8] sm:$0xff]  ;;  %v450_v52 = vld [vmem:[#allocation8 + $0xc0] sm:$0xff]  ;;  %v459_v54 = vld [vmem:[#allocation8 + $0x108] sm:$0xff]  ;;  %v1192_v56 = vpack.c.bf16 %v448_v48, %v444_v47 }
  0x58   :  { %1051 = vmatmul.mubr.msk.f32.vlgmr.msra.gmra.mrb[0].mxu0 %vm250_vm2, %v83_v21  ;;  %v454_v53 = vld [vmem:[#allocation8 + $0xe0] sm:$0xff]  ;;  %v463_v55 = vld [vmem:[#allocation8 + $0x128] sm:$0xff]  ;;  %v1194_v57 = vpack.c.bf16 %v457_v51, %v453_v49  ;;  %v452_v59 = vld [vmem:[#allocation8 + $0xd0] sm:$0xff] }
  0x59   :  { %1057 = vmatpush1.bf16.msra.mxu0 %v1056_v22  ;;  %v1068_v58 = vpack.c.bf16 %v454_v53, %v450_v52  ;;  %v456_v60 = vld [vmem:[#allocation8 + $0xf0] sm:$0xff]  ;;  %v461_v61 = vld [vmem:[#allocation8 + $0x118] sm:$0xff]  ;;  %v1070_v62 = vpack.c.bf16 %v463_v55, %v459_v54  ;;  %v458_v0 = vld [vmem:[#allocation8 + $0x100] sm:$0xff] }
  0x5a   :  { %1059 = vmatprep.subr.bf16.mxu0 %v1058_v26  ;;  %1052 = vmatmul.mubr.msk.f32.vlgmr.msra.gmra.mrb[0].mxu1 %vm250_vm2, %v83_v21  ;;  %v465_v63 = vld [vmem:[#allocation8 + $0x138] sm:$0xff]  ;;  %v462_v1 = vld [vmem:[#allocation8 + $0x120] sm:$0xff]  ;;  %v467_v2 = vld [vmem:[#allocation8 + $0x148] sm:$0xff]  ;;  %v1196_v4 = vpack.c.bf16 %v456_v60, %v452_v59 }
  0x5b   :  { %1185 = vmatpush1.bf16.msra.mxu1 %v1184_v32  ;;  %v471_v3 = vld [vmem:[#allocation8 + $0x168] sm:$0xff]  ;;  %v1198_v5 = vpack.c.bf16 %v465_v63, %v461_v61  ;;  %v1072_v6 = vpack.c.bf16 %v462_v1, %v458_v0  ;;  %v460_v7 = vld [vmem:[#allocation8 + $0x110] sm:$0xff]  ;;  %v469_v9 = vld [vmem:[#allocation8 + $0x158] sm:$0xff] }
  0x5c   :  { %1187 = vmatprep.subr.bf16.mxu1 %v1186_v33  ;;  %v464_v8 = vld [vmem:[#allocation8 + $0x130] sm:$0xff]  ;;  %v1074_v10 = vpack.c.bf16 %v471_v3, %v467_v2  ;;  %v473_v11 = vld [vmem:[#allocation8 + $0x178] sm:$0xff]  ;;  %v466_v12 = vld [vmem:[#allocation8 + $0x140] sm:$0xff] }
  0x5d   :  { %1061 = vmatpush1.bf16.msra.mxu0 %v1060_v34  ;;  %v470_v13 = vld [vmem:[#allocation8 + $0x160] sm:$0xff]  ;;  %v475_v14 = vld [vmem:[#allocation8 + $0x188] sm:$0xff]  ;;  %v1200_v16 = vpack.c.bf16 %v464_v8, %v460_v7  ;;  %v1202_v17 = vpack.c.bf16 %v473_v11, %v469_v9  ;;  %v468_v19 = vld [vmem:[#allocation8 + $0x150] sm:$0xff] }
  0x5e   :  { %1063 = vmatprep.subr.bf16.mxu0 %v1062_v38  ;;  %v479_v15 = vld [vmem:[#allocation8 + $0x1a8] sm:$0xff]  ;;  %v1076_v18 = vpack.c.bf16 %v470_v13, %v466_v12  ;;  %v472_v20 = vld [vmem:[#allocation8 + $0x170] sm:$0xff]  ;;  %v477_v21 = vld [vmem:[#allocation8 + $0x198] sm:$0xff] }
  0x5f   :  { %1189 = vmatpush1.bf16.msra.mxu1 %v1188_v44  ;;  %v1078_v22 = vpack.c.bf16 %v479_v15, %v475_v14  ;;  %v481_v23 = vld [vmem:[#allocation8 + $0x1b8] sm:$0xff]  ;;  %v474_v24 = vld [vmem:[#allocation8 + $0x180] sm:$0xff]  ;;  %v483_v26 = vld [vmem:[#allocation8 + $0x1c8] sm:$0xff]  ;;  %v1204_v28 = vpack.c.bf16 %v472_v20, %v468_v19 }
  0x60   :  { %1191 = vmatprep.subr.bf16.mxu1 %v1190_v45  ;;  %v478_v25 = vld [vmem:[#allocation8 + $0x1a0] sm:$0xff]  ;;  %v487_v27 = vld [vmem:[#allocation8 + $0x1e8] sm:$0xff]  ;;  %v1206_v29 = vpack.c.bf16 %v481_v23, %v477_v21  ;;  %v476_v31 = vld [vmem:[#allocation8 + $0x190] sm:$0xff] }
  0x61   :  { %1065 = vmatpush1.bf16.msra.mxu0 %v1064_v46  ;;  %v1080_v30 = vpack.c.bf16 %v478_v25, %v474_v24  ;;  %v480_v32 = vld [vmem:[#allocation8 + $0x1b0] sm:$0xff]  ;;  %v485_v33 = vld [vmem:[#allocation8 + $0x1d8] sm:$0xff]  ;;  %v1082_v34 = vpack.c.bf16 %v487_v27, %v483_v26  ;;  %v482_v36 = vld [vmem:[#allocation8 + $0x1c0] sm:$0xff] }
  0x62   :  { %1067 = vmatprep.subr.bf16.mxu0 %v1066_v50  ;;  %v489_v35 = vld [vmem:[#allocation8 + $0x1f8] sm:$0xff]  ;;  %v486_v37 = vld [vmem:[#allocation8 + $0x1e0] sm:$0xff]  ;;  %v491_v38 = vld [vmem:[#allocation8 + $0x208] sm:$0xff]  ;;  %v1208_v40 = vpack.c.bf16 %v480_v32, %v476_v31 }
  0x63   :  { %1193 = vmatpush1.bf16.msra.mxu1 %v1192_v56  ;;  %v495_v39 = vld [vmem:[#allocation8 + $0x228] sm:$0xff]  ;;  %v1210_v41 = vpack.c.bf16 %v489_v35, %v485_v33  ;;  %v1084_v42 = vpack.c.bf16 %v486_v37, %v482_v36  ;;  %v484_v43 = vld [vmem:[#allocation8 + $0x1d0] sm:$0xff]  ;;  %v493_v45 = vld [vmem:[#allocation8 + $0x218] sm:$0xff] }
  0x64   :  { %1195 = vmatprep.subr.bf16.mxu1 %v1194_v57  ;;  %v488_v44 = vld [vmem:[#allocation8 + $0x1f0] sm:$0xff]  ;;  %v1086_v46 = vpack.c.bf16 %v495_v39, %v491_v38  ;;  %v497_v47 = vld [vmem:[#allocation8 + $0x238] sm:$0xff]  ;;  %v490_v48 = vld [vmem:[#allocation8 + $0x200] sm:$0xff] }
  0x65   :  { %1069 = vmatpush1.bf16.msra.mxu0 %v1068_v58  ;;  %v494_v49 = vld [vmem:[#allocation8 + $0x220] sm:$0xff]  ;;  %v499_v50 = vld [vmem:[#allocation8 + $0x248] sm:$0xff]  ;;  %v1212_v52 = vpack.c.bf16 %v488_v44, %v484_v43  ;;  %v1214_v53 = vpack.c.bf16 %v497_v47, %v493_v45  ;;  %v492_v55 = vld [vmem:[#allocation8 + $0x210] sm:$0xff] }
  0x66   :  { %1071 = vmatprep.subr.bf16.mxu0 %v1070_v62  ;;  %v503_v51 = vld [vmem:[#allocation8 + $0x268] sm:$0xff]  ;;  %v1088_v54 = vpack.c.bf16 %v494_v49, %v490_v48  ;;  %v496_v56 = vld [vmem:[#allocation8 + $0x230] sm:$0xff]  ;;  %v501_v57 = vld [vmem:[#allocation8 + $0x258] sm:$0xff] }
  0x67   :  { %1197 = vmatpush1.bf16.msra.mxu1 %v1196_v4  ;;  %v1090_v58 = vpack.c.bf16 %v503_v51, %v499_v50  ;;  %v505_v59 = vld [vmem:[#allocation8 + $0x278] sm:$0xff]  ;;  %v498_v60 = vld [vmem:[#allocation8 + $0x240] sm:$0xff]  ;;  %v507_v62 = vld [vmem:[#allocation8 + $0x288] sm:$0xff]  ;;  %v1216_v0 = vpack.c.bf16 %v496_v56, %v492_v55 }
  0x68   :  { %1199 = vmatprep.subr.bf16.mxu1 %v1198_v5  ;;  %v502_v61 = vld [vmem:[#allocation8 + $0x260] sm:$0xff]  ;;  %v511_v63 = vld [vmem:[#allocation8 + $0x2a8] sm:$0xff]  ;;  %v1218_v1 = vpack.c.bf16 %v505_v59, %v501_v57  ;;  %v500_v3 = vld [vmem:[#allocation8 + $0x250] sm:$0xff] }
  0x69   :  { %1073 = vmatpush1.bf16.msra.mxu0 %v1072_v6  ;;  %v1092_v2 = vpack.c.bf16 %v502_v61, %v498_v60  ;;  %v504_v4 = vld [vmem:[#allocation8 + $0x270] sm:$0xff]  ;;  %v509_v5 = vld [vmem:[#allocation8 + $0x298] sm:$0xff]  ;;  %v1094_v6 = vpack.c.bf16 %v511_v63, %v507_v62  ;;  %v506_v8 = vld [vmem:[#allocation8 + $0x280] sm:$0xff] }
  0x6a   :  { %1075 = vmatprep.subr.bf16.mxu0 %v1074_v10  ;;  %v513_v7 = vld [vmem:[#allocation8 + $0x2b8] sm:$0xff]  ;;  %v510_v9 = vld [vmem:[#allocation8 + $0x2a0] sm:$0xff]  ;;  %v515_v10 = vld [vmem:[#allocation8 + $0x2c8] sm:$0xff]  ;;  %v1220_v12 = vpack.c.bf16 %v504_v4, %v500_v3 }
  0x6b   :  { %1201 = vmatpush1.bf16.msra.mxu1 %v1200_v16  ;;  %v519_v11 = vld [vmem:[#allocation8 + $0x2e8] sm:$0xff]  ;;  %v1222_v13 = vpack.c.bf16 %v513_v7, %v509_v5  ;;  %v1096_v14 = vpack.c.bf16 %v510_v9, %v506_v8  ;;  %v508_v15 = vld [vmem:[#allocation8 + $0x290] sm:$0xff]  ;;  %v521_v19 = vld [vmem:[#allocation8 + $0x2f8] sm:$0xff] }
  0x6c   :  { %1203 = vmatprep.subr.bf16.mxu1 %v1202_v17  ;;  %v512_v16 = vld [vmem:[#allocation8 + $0x2b0] sm:$0xff]  ;;  %v517_v17 = vld [vmem:[#allocation8 + $0x2d8] sm:$0xff]  ;;  %v514_v20 = vld [vmem:[#allocation8 + $0x2c0] sm:$0xff] }
  0x6d   :  { %1077 = vmatpush1.bf16.msra.mxu0 %v1076_v18  ;;  %v1098_v18 = vpack.c.bf16 %v519_v11, %v515_v10  ;;  %v518_v21 = vld [vmem:[#allocation8 + $0x2e0] sm:$0xff]  ;;  %v527_v23 = vld [vmem:[#allocation8 + $0x328] sm:$0xff]  ;;  %v1224_v24 = vpack.c.bf16 %v512_v16, %v508_v15  ;;  %v1226_v25 = vpack.c.bf16 %v521_v19, %v517_v17  ;;  %v516_v27 = vld [vmem:[#allocation8 + $0x2d0] sm:$0xff] }
  0x6e   :  { %1079 = vmatprep.subr.bf16.mxu0 %v1078_v22  ;;  %v523_v22 = vld [vmem:[#allocation8 + $0x308] sm:$0xff]  ;;  %v1100_v26 = vpack.c.bf16 %v518_v21, %v514_v20  ;;  %v529_v31 = vld [vmem:[#allocation8 + $0x338] sm:$0xff]  ;;  %v522_v32 = vld [vmem:[#allocation8 + $0x300] sm:$0xff] }
  0x6f   :  { %1205 = vmatpush1.bf16.msra.mxu1 %v1204_v28  ;;  %v520_v28 = vld [vmem:[#allocation8 + $0x2f0] sm:$0xff]  ;;  %v526_v33 = vld [vmem:[#allocation8 + $0x320] sm:$0xff]  ;;  %v535_v35 = vld [vmem:[#allocation8 + $0x368] sm:$0xff] }
  0x70   :  { %1207 = vmatprep.subr.bf16.mxu1 %v1206_v29  ;;  %v525_v29 = vld [vmem:[#allocation8 + $0x318] sm:$0xff]  ;;  %v1228_v36 = vpack.c.bf16 %v520_v28, %v516_v27  ;;  %v1104_v38 = vpack.c.bf16 %v526_v33, %v522_v32  ;;  %v524_v39 = vld [vmem:[#allocation8 + $0x310] sm:$0xff]  ;;  %v530_v44 = vld [vmem:[#allocation8 + $0x340] sm:$0xff] }
  0x71   :  { %1081 = vmatpush1.bf16.msra.mxu0 %v1080_v30  ;;  %v1102_v30 = vpack.c.bf16 %v527_v23, %v523_v22  ;;  %v1230_v37 = vpack.c.bf16 %v529_v31, %v525_v29  ;;  %v537_v43 = vld [vmem:[#allocation8 + $0x378] sm:$0xff]  ;;  %v534_v45 = vld [vmem:[#allocation8 + $0x360] sm:$0xff]  ;;  %v543_v47 = vld [vmem:[#allocation8 + $0x3a8] sm:$0xff] }
  0x72   :  { %1083 = vmatprep.subr.bf16.mxu0 %v1082_v34  ;;  %v531_v34 = vld [vmem:[#allocation8 + $0x348] sm:$0xff]  ;;  %v1108_v50 = vpack.c.bf16 %v534_v45, %v530_v44  ;;  %v532_v51 = vld [vmem:[#allocation8 + $0x350] sm:$0xff]  ;;  %v545_v55 = vld [vmem:[#allocation8 + $0x3b8] sm:$0xff] }
  0x73   :  { %1209 = vmatpush1.bf16.msra.mxu1 %v1208_v40  ;;  %v528_v40 = vld [vmem:[#allocation8 + $0x330] sm:$0xff]  ;;  %v538_v56 = vld [vmem:[#allocation8 + $0x380] sm:$0xff]  ;;  %v553_v4 = vld [vmem:[#allocation8 + $0x3f8] sm:$0xff] }
  0x74   :  { %1211 = vmatprep.subr.bf16.mxu1 %v1210_v41  ;;  %v533_v41 = vld [vmem:[#allocation8 + $0x358] sm:$0xff]  ;;  %v1232_v48 = vpack.c.bf16 %v528_v40, %v524_v39  ;;  %v542_v57 = vld [vmem:[#allocation8 + $0x3a0] sm:$0xff]  ;;  %v540_v61 = vld [vmem:[#allocation8 + $0x390] sm:$0xff] }
  0x75   :  { %1085 = vmatpush1.bf16.msra.mxu0 %v1084_v42  ;;  %v1106_v42 = vpack.c.bf16 %v535_v35, %v531_v34  ;;  %v1234_v49 = vpack.c.bf16 %v537_v43, %v533_v41  ;;  %v1112_v60 = vpack.c.bf16 %v542_v57, %v538_v56  ;;  %v544_v62 = vld [vmem:[#allocation8 + $0x3b0] sm:$0xff]  ;;  %v546_v5 = vld [vmem:[#allocation8 + $0x3c0] sm:$0xff]  ;;  %v561_v16 = vld [vmem:[#allocation8 + $0x438] sm:$0xff] }
  0x76   :  { %1087 = vmatprep.subr.bf16.mxu0 %v1086_v46  ;;  %v539_v46 = vld [vmem:[#allocation8 + $0x388] sm:$0xff]  ;;  %v1240_v63 = vpack.c.bf16 %v544_v62, %v540_v61  ;;  %v548_v9 = vld [vmem:[#allocation8 + $0x3d0] sm:$0xff]  ;;  %v554_v28 = vld [vmem:[#allocation8 + $0x400] sm:$0xff] }
  0x77   :  { %1213 = vmatpush1.bf16.msra.mxu1 %v1212_v52  ;;  %v536_v52 = vld [vmem:[#allocation8 + $0x370] sm:$0xff]  ;;  %v558_v29 = vld [vmem:[#allocation8 + $0x420] sm:$0xff]  ;;  %v563_v35 = vld [vmem:[#allocation8 + $0x448] sm:$0xff] }
  0x78   :  { %1215 = vmatprep.subr.bf16.mxu1 %v1214_v53  ;;  %v541_v53 = vld [vmem:[#allocation8 + $0x398] sm:$0xff]  ;;  %v552_v10 = vld [vmem:[#allocation8 + $0x3f0] sm:$0xff]  ;;  %v1120_v43 = vpack.c.bf16 %v558_v29, %v554_v28  ;;  %v562_v45 = vld [vmem:[#allocation8 + $0x440] sm:$0xff] }
  0x79   :  { %1089 = vmatpush1.bf16.msra.mxu0 %v1088_v54  ;;  %v1110_v54 = vpack.c.bf16 %v543_v47, %v539_v46  ;;  %v1238_v59 = vpack.c.bf16 %v545_v55, %v541_v53  ;;  %v1244_v11 = vpack.c.bf16 %v552_v10, %v548_v9  ;;  %v396_v21 = vld [vmem:[%s1590_s4] sm:$0xf]  ;;  %v565_v39 = vld [vmem:[#allocation8 + $0x458] sm:$0xff]  ;;  %v566_v46 = vld [vmem:[#allocation8 + $0x460] sm:$0xff] }
  0x7a   :  { %1091 = vmatprep.subr.bf16.mxu0 %v1090_v58  ;;  %v1236_v58 = vpack.c.bf16 %v536_v52, %v532_v51  ;;  %v556_v33 = vld [vmem:[#allocation8 + $0x410] sm:$0xff]  ;;  %v569_v40 = vld [vmem:[#allocation8 + $0x478] sm:$0xff]  ;;  %v575_v56 = vld [vmem:[#allocation8 + $0x4a8] sm:$0xff] }
  0x7b   :  { %1217 = vmatpush1.bf16.msra.mxu1 %v1216_v0  ;;  %v547_v0 = vld [vmem:[#allocation8 + $0x3c8] sm:$0xff]  ;;  %v560_v34 = vld [vmem:[#allocation8 + $0x430] sm:$0xff]  ;;  %v1250_v51 = vpack.c.bf16 %v569_v40, %v565_v39  ;;  %v573_v57 = vld [vmem:[#allocation8 + $0x498] sm:$0xff] }
  0x7c   :  { %1219 = vmatprep.subr.bf16.mxu1 %v1218_v1  ;;  %v551_v1 = vld [vmem:[#allocation8 + $0x3e8] sm:$0xff]  ;;  %v1248_v44 = vpack.c.bf16 %v560_v34, %v556_v33  ;;  %v564_v52 = vld [vmem:[#allocation8 + $0x450] sm:$0xff]  ;;  %v570_v62 = vld [vmem:[#allocation8 + $0x480] sm:$0xff] }
  0x7d   :  { %1093 = vmatpush1.bf16.msra.mxu0 %v1092_v2  ;;  %v549_v2 = vld [vmem:[#allocation8 + $0x3d8] sm:$0xff]  ;;  %v1114_v3 = vpack.c.bf16 %v551_v1, %v547_v0  ;;  %v568_v53 = vld [vmem:[#allocation8 + $0x470] sm:$0xff]  ;;  %v578_v10 = vld [vmem:[#allocation8 + $0x4c0] sm:$0xff] }
  0x7e   :  { %1095 = vmatprep.subr.bf16.mxu0 %v1094_v6  ;;  %v550_v6 = vld [vmem:[#allocation8 + $0x3e0] sm:$0xff]  ;;  %v1242_v7 = vpack.c.bf16 %v553_v4, %v549_v2  ;;  %v1252_v61 = vpack.c.bf16 %v568_v53, %v564_v52  ;;  %v572_v2 = vld [vmem:[#allocation8 + $0x490] sm:$0xff]  ;;  %v579_v4 = vld [vmem:[#allocation8 + $0x4c8] sm:$0xff] }
  0x7f   :  { %1221 = vmatpush1.bf16.msra.mxu1 %v1220_v12  ;;  %v1116_v8 = vpack.c.bf16 %v550_v6, %v546_v5  ;;  %v555_v12 = vld [vmem:[#allocation8 + $0x408] sm:$0xff]  ;;  %v581_v6 = vld [vmem:[#allocation8 + $0x4d8] sm:$0xff]  ;;  %v598_v39 = vld [vmem:[#allocation8 + $0x560] sm:$0xff] }
  0x80   :  { %1223 = vmatprep.subr.bf16.mxu1 %v1222_v13  ;;  %v559_v13 = vld [vmem:[#allocation8 + $0x428] sm:$0xff]  ;;  %v597_v34 = vld [vmem:[#allocation8 + $0x558] sm:$0xff]  ;;  %v606_v52 = vld [vmem:[#allocation8 + $0x5a0] sm:$0xff] }
  0x81   :  { %1097 = vmatpush1.bf16.msra.mxu0 %v1096_v14  ;;  %v557_v14 = vld [vmem:[#allocation8 + $0x418] sm:$0xff]  ;;  %v1118_v15 = vpack.c.bf16 %v559_v13, %v555_v12  ;;  %v583_v5 = vld [vmem:[#allocation8 + $0x4e8] sm:$0xff] }
  0x82   :  { %1099 = vmatprep.subr.bf16.mxu0 %v1098_v18  ;;  %v1246_v17 = vpack.c.bf16 %v561_v16, %v557_v14  ;;  %v398_v18 = vlaneseq  ;;  %v1130_v12 = vpack.c.bf16 %v583_v5, %v579_v4  ;;  %v580_v14 = vld [vmem:[#allocation8 + $0x4d0] sm:$0xff]  ;;  %v587_v16 = vld [vmem:[#allocation8 + $0x508] sm:$0xff] }
  0x83   :  { %1225 = vmatpush1.bf16.msra.mxu1 %v1224_v24  ;;  %v599_v33 = vld [vmem:[#allocation8 + $0x568] sm:$0xff]  ;;  %v616_v4 = vld [vmem:[#allocation8 + $0x5f0] sm:$0xff] }
  0x84   :  { %1227 = vmatprep.subr.bf16.mxu1 %v1226_v25  ;;  %v399_v19 = vshrl.u32 %v398_v18, 7  ;;  %v589_v18 = vld [vmem:[#allocation8 + $0x518] sm:$0xff]  ;;  %v619_v5 = vld [vmem:[#allocation8 + $0x608] sm:$0xff] }
  0x85   :  { %1101 = vmatpush1.bf16.msra.mxu0 %v1100_v26 }
  0x86   :  { %1103 = vmatprep.subr.bf16.mxu0 %v1102_v30  ;;  %v1551_v20 = vsub.s32 0, %v399_v19  ;;  %v1556_v22 = vsub.s32 1, %v399_v19  ;;  %v1558_v23 = vsub.s32 2, %v399_v19  ;;  %v1561_v25 = vsub.s32 3, %v399_v19  ;;  %v593_v19 = vld [vmem:[#allocation8 + $0x538] sm:$0xff] }
  0x87   :  { %1229 = vmatpush1.bf16.msra.mxu1 %v1228_v36  ;;  %v1262_v29 = vpack.c.bf16 %v593_v19, %v589_v18  ;;  %v631_v18 = vld [vmem:[#allocation8 + $0x668] sm:$0xff]  ;;  %v629_v19 = vld [vmem:[#allocation8 + $0x658] sm:$0xff] }
  0x88   :  { %1231 = vmatprep.subr.bf16.mxu1 %v1230_v37  ;;  %v401_v24 = vrot.slane %v396_v21, %v1551_v20  ;;  %v405_v26 = vrot.slane %v396_v21, %v1556_v22  ;;  %v409_v30 = vrot.slane %v396_v21, %v1558_v23  ;;  %v413_v36 = vrot.slane %v396_v21, %v1561_v25 }
  0x89   :  { %1105 = vmatpush1.bf16.msra.mxu0 %v1104_v38  ;;  %v567_v38 = vld [vmem:[#allocation8 + $0x468] sm:$0xff] }
  0x8a   :  { %1107 = vmatprep.subr.bf16.mxu0 %v1106_v42 }
  0x8b   :  { %1233 = vmatpush1.bf16.msra.mxu1 %v1232_v48 }
  0x8c   :  { %1235 = vmatprep.subr.bf16.mxu1 %v1234_v49 }
  0x8d   :  { %1109 = vmatpush1.bf16.msra.mxu0 %v1108_v50  ;;  %v1122_v50 = vpack.c.bf16 %v567_v38, %v563_v35  ;;  %v601_v35 = vld [vmem:[#allocation8 + $0x578] sm:$0xff]  ;;  %v594_v38 = vld [vmem:[#allocation8 + $0x540] sm:$0xff] }
  0x8e   :  { %1111 = vmatprep.subr.bf16.mxu0 %v1110_v54  ;;  %v571_v54 = vld [vmem:[#allocation8 + $0x488] sm:$0xff] }
  0x8f   :  { %1237 = vmatpush1.bf16.msra.mxu1 %v1236_v58  ;;  %v577_v58 = vld [vmem:[#allocation8 + $0x4b8] sm:$0xff]  ;;  %v1126_v0 = vpack.c.bf16 %v575_v56, %v571_v54  ;;  %v608_v56 = vld [vmem:[#allocation8 + $0x5b0] sm:$0xff] }
  0x90   :  { %1239 = vmatprep.subr.bf16.mxu1 %v1238_v59  ;;  %v1254_v1 = vpack.c.bf16 %v577_v58, %v573_v57  ;;  %v611_v57 = vld [vmem:[#allocation8 + $0x5c8] sm:$0xff] }
  0x91   :  { %1113 = vmatpush1.bf16.msra.mxu0 %v1112_v60  ;;  %v1124_v60 = vpack.c.bf16 %v566_v46, %v562_v45  ;;  %v607_v45 = vld [vmem:[#allocation8 + $0x5a8] sm:$0xff]  ;;  %v605_v46 = vld [vmem:[#allocation8 + $0x598] sm:$0xff] }
  0x92   :  { %1115 = vmatprep.subr.bf16.mxu0 %v1114_v3  ;;  %v576_v3 = vld [vmem:[#allocation8 + $0x4b0] sm:$0xff]  ;;  %v615_v58 = vld [vmem:[#allocation8 + $0x5e8] sm:$0xff] }
  0x93   :  { %1241 = vmatpush1.bf16.msra.mxu1 %v1240_v63  ;;  %v574_v63 = vld [vmem:[#allocation8 + $0x4a0] sm:$0xff]  ;;  %v1256_v9 = vpack.c.bf16 %v576_v3, %v572_v2  ;;  %v612_v3 = vld [vmem:[#allocation8 + $0x5d0] sm:$0xff] }
  0x94   :  { %1243 = vmatprep.subr.bf16.mxu1 %v1242_v7  ;;  %v585_v7 = vld [vmem:[#allocation8 + $0x4f8] sm:$0xff] }
  0x95   :  { %1117 = vmatpush1.bf16.msra.mxu0 %v1116_v8  ;;  %v1128_v8 = vpack.c.bf16 %v574_v63, %v570_v62  ;;  %v1258_v13 = vpack.c.bf16 %v585_v7, %v581_v6  ;;  %v610_v63 = vld [vmem:[#allocation8 + $0x5c0] sm:$0xff]  ;;  %v623_v6 = vld [vmem:[#allocation8 + $0x628] sm:$0xff]  ;;  %v621_v7 = vld [vmem:[#allocation8 + $0x618] sm:$0xff] }
  0x96   :  { %1119 = vmatprep.subr.bf16.mxu0 %v1118_v15  ;;  %v584_v15 = vld [vmem:[#allocation8 + $0x4f0] sm:$0xff] }
  0x97   :  { %1245 = vmatpush1.bf16.msra.mxu1 %v1244_v11  ;;  %v582_v11 = vld [vmem:[#allocation8 + $0x4e0] sm:$0xff] }
  0x98   :  { %1247 = vmatprep.subr.bf16.mxu1 %v1246_v17  ;;  %v591_v17 = vld [vmem:[#allocation8 + $0x528] sm:$0xff]  ;;  %v1132_v21 = vpack.c.bf16 %v582_v11, %v578_v10  ;;  %v1276_v10 = vpack.c.bf16 %v616_v4, %v612_v3  ;;  %v618_v11 = vld [vmem:[#allocation8 + $0x600] sm:$0xff]  ;;  %v652_v4 = vld [vmem:[#allocation8 + $0x710] sm:$0xff] }
  0x99   :  { %v1134_v28 = vpack.c.bf16 %v591_v17, %v587_v16  ;;  %v624_v16 = vld [vmem:[#allocation8 + $0x630] sm:$0xff]  ;;  %v627_v17 = vld [vmem:[#allocation8 + $0x648] sm:$0xff] }
 0x12b   :  { %v320_v27 = vpop.f32.mrb[0].mxu0 }
 0x12c   :  { %v418_v31 = vadd.f32 %v401_v24, %v320_v27  ;;  %v322_v32 = vpop.f32.mrb[1].mxu0  ;;  %v1260_v24 = vpack.c.bf16 %v584_v15, %v580_v14  ;;  %v590_v27 = vld [vmem:[#allocation8 + $0x520] sm:$0xff]  ;;  %v620_v15 = vld [vmem:[#allocation8 + $0x610] sm:$0xff] }
 0x12d   :  { %v419_v37 = vadd.f32 %v405_v26, %v322_v32  ;;  %v391_v41 = vpop.f32.mrb[0].mxu1  ;;  %v586_v26 = vld [vmem:[#allocation8 + $0x500] sm:$0xff]  ;;  %v595_v32 = vld [vmem:[#allocation8 + $0x548] sm:$0xff] }
 0x12e   :  { %v1566_v47 = vadd.f32 %v409_v30, %v391_v41  ;;  %v393_v48 = vpop.f32.mrb[1].mxu1  ;;  %v422_v49 = vmax.f32 %v418_v31, 0.0  ;;  %v588_v30 = vld [vmem:[#allocation8 + $0x510] sm:$0xff]  ;;  %v1138_v40 = vpack.c.bf16 %v599_v33, %v595_v32  ;;  %v1266_v41 = vpack.c.bf16 %v601_v35, %v597_v34  ;;  %v635_v33 = vld [vmem:[#allocation8 + $0x688] sm:$0xff]  ;;  %v637_v35 = vld [vmem:[#allocation8 + $0x698] sm:$0xff] }
 0x12f   :  { %v423_v42 = vmax.f32 %v419_v37, 0.0  ;;  %v421_v55 = vadd.f32 %v413_v36, %v393_v48  ;;  %v592_v31 = vld [vmem:[#allocation8 + $0x530] sm:$0xff]  ;;  %v1136_v36 = vpack.c.bf16 %v590_v27, %v586_v26  ;;  %v609_v48 = vld [vmem:[#allocation8 + $0x5b8] sm:$0xff]  ;;  %v1280_v26 = vpack.c.bf16 %v624_v16, %v620_v15  ;;  %v626_v27 = vld [vmem:[#allocation8 + $0x640] sm:$0xff] }
 0x130   :  { %v1264_v37 = vpack.c.bf16 %v592_v31, %v588_v30  ;;  %v1270_v54 = vpack.c.bf16 %v609_v48, %v605_v46  ;;  %v628_v31 = vld [vmem:[#allocation8 + $0x650] sm:$0xff]  ;;  %v639_v34 = vld [vmem:[#allocation8 + $0x6a8] sm:$0xff]  ;;  %v645_v48 = vld [vmem:[#allocation8 + $0x6d8] sm:$0xff] }
 0x131   :  { %768 = vmatprep.mubr.f32.mxu0 %v423_v42  ;;  %910 = vmatprep.mubr.f32.mxu1 %v423_v42  ;;  %v425_v59 = vmax.f32 %v421_v55, 0.0  ;;  %v596_v42 = vld [vmem:[#allocation8 + $0x550] sm:$0xff]  ;;  %v647_v46 = vld [vmem:[#allocation8 + $0x6e8] sm:$0xff] }
 0x132   :  { %769 = vmatmul.mubr.f32.vlgmr.msra.gmra.mrb[2].mxu0 %v422_v49  ;;  %911 = vmatmul.mubr.f32.vlgmr.msra.gmra.mrb[2].mxu1 %v422_v49  ;;  %v1140_v49 = vpack.c.bf16 %v598_v39, %v594_v38  ;;  %v604_v55 = vld [vmem:[#allocation8 + $0x590] sm:$0xff]  ;;  %v634_v39 = vld [vmem:[#allocation8 + $0x680] sm:$0xff] }
 0x133   :  { %1121 = vmatpush1.bf16.msra.mxu0 %v1120_v43  ;;  %1249 = vmatpush1.bf16.msra.mxu1 %v1248_v44  ;;  %v600_v43 = vld [vmem:[#allocation8 + $0x570] sm:$0xff]  ;;  %v603_v44 = vld [vmem:[#allocation8 + $0x588] sm:$0xff]  ;;  %v1272_v62 = vpack.c.bf16 %v608_v56, %v604_v55 }
 0x134   :  { %1123 = vmatprep.subr.bf16.mxu0 %v1122_v50  ;;  %1251 = vmatprep.subr.bf16.mxu1 %v1250_v51  ;;  %v1268_v50 = vpack.c.bf16 %v600_v43, %v596_v42  ;;  %v602_v51 = vld [vmem:[#allocation8 + $0x580] sm:$0xff]  ;;  %v1142_v53 = vpack.c.bf16 %v607_v45, %v603_v44  ;;  %v632_v32 = vld [vmem:[#allocation8 + $0x670] sm:$0xff]  ;;  %v643_v45 = vld [vmem:[#allocation8 + $0x6c8] sm:$0xff] }
 0x135   :  { %839 = vmatprep.mubr.f32.mxu0 %v425_v59  ;;  %981 = vmatprep.mubr.f32.mxu1 %v425_v59  ;;  %v613_v59 = vld [vmem:[#allocation8 + $0x5d8] sm:$0xff]  ;;  %v1284_v38 = vpack.c.bf16 %v632_v32, %v628_v31  ;;  %v636_v43 = vld [vmem:[#allocation8 + $0x690] sm:$0xff] }
 0x136   :  { %v640_v44 = vld [vmem:[#allocation8 + $0x6b0] sm:$0xff] }
 0x137   :  { %1125 = vmatpush1.bf16.msra.mxu0 %v1124_v60  ;;  %1253 = vmatpush1.bf16.msra.mxu1 %v1252_v61  ;;  %v617_v60 = vld [vmem:[#allocation8 + $0x5f8] sm:$0xff]  ;;  %v1144_v61 = vpack.c.bf16 %v606_v52, %v602_v51  ;;  %v1288_v51 = vpack.c.bf16 %v640_v44, %v636_v43  ;;  %v642_v52 = vld [vmem:[#allocation8 + $0x6c0] sm:$0xff]  ;;  %v644_v56 = vld [vmem:[#allocation8 + $0x6d0] sm:$0xff] }
 0x138   :  { %1127 = vmatprep.subr.bf16.mxu0 %v1126_v0  ;;  %1255 = vmatprep.subr.bf16.mxu1 %v1254_v1  ;;  %v614_v0 = vld [vmem:[#allocation8 + $0x5e0] sm:$0xff]  ;;  %v1146_v1 = vpack.c.bf16 %v615_v58, %v611_v57  ;;  %v1274_v2 = vpack.c.bf16 %v617_v60, %v613_v59  ;;  %v648_v57 = vld [vmem:[#allocation8 + $0x6f0] sm:$0xff]  ;;  %v651_v58 = vld [vmem:[#allocation8 + $0x708] sm:$0xff] }
 0x139   :  { %v655_v59 = vld [vmem:[#allocation8 + $0x728] sm:$0xff]  ;;  %v653_v60 = vld [vmem:[#allocation8 + $0x718] sm:$0xff]  ;;  %v660_v16 = vld [vmem:[#allocation8 + $0x750] sm:$0xff] }
 0x13a   :  { %v668_v32 = vld [vmem:[#allocation8 + $0x790] sm:$0xff]  ;;  %v678_v43 = vld [vmem:[#allocation8 + $0x7e0] sm:$0xff] }
 0x13b   :  { %1129 = vmatpush1.bf16.msra.mxu0 %v1128_v8  ;;  %1257 = vmatpush1.bf16.msra.mxu1 %v1256_v9  ;;  %v625_v8 = vld [vmem:[#allocation8 + $0x638] sm:$0xff]  ;;  %v1148_v9 = vpack.c.bf16 %v614_v0, %v610_v63  ;;  %v1292_v63 = vpack.c.bf16 %v648_v57, %v644_v56  ;;  %v650_v0 = vld [vmem:[#allocation8 + $0x700] sm:$0xff]  ;;  %v676_v44 = vld [vmem:[#allocation8 + $0x7d0] sm:$0xff] }
 0x13c   :  { %1131 = vmatprep.subr.bf16.mxu0 %v1130_v12  ;;  %1259 = vmatprep.subr.bf16.mxu1 %v1258_v13  ;;  %v622_v12 = vld [vmem:[#allocation8 + $0x620] sm:$0xff]  ;;  %v1150_v13 = vpack.c.bf16 %v623_v6, %v619_v5  ;;  %v1278_v14 = vpack.c.bf16 %v625_v8, %v621_v7  ;;  %v656_v5 = vld [vmem:[#allocation8 + $0x730] sm:$0xff]  ;;  %v659_v6 = vld [vmem:[#allocation8 + $0x748] sm:$0xff] }
 0x13d   :  { %v663_v7 = vld [vmem:[#allocation8 + $0x768] sm:$0xff]  ;;  %v661_v8 = vld [vmem:[#allocation8 + $0x758] sm:$0xff] }
 0x13f   :  { %1133 = vmatpush1.bf16.msra.mxu0 %v1132_v21  ;;  %1261 = vmatpush1.bf16.msra.mxu1 %v1260_v24  ;;  %v633_v21 = vld [vmem:[#allocation8 + $0x678] sm:$0xff]  ;;  %v1152_v24 = vpack.c.bf16 %v622_v12, %v618_v11  ;;  %v1296_v11 = vpack.c.bf16 %v656_v5, %v652_v4  ;;  %v658_v12 = vld [vmem:[#allocation8 + $0x740] sm:$0xff] }
 0x140   :  { %1135 = vmatprep.subr.bf16.mxu0 %v1134_v28  ;;  %1263 = vmatprep.subr.bf16.mxu1 %v1262_v29  ;;  %v630_v28 = vld [vmem:[#allocation8 + $0x660] sm:$0xff]  ;;  %v1154_v29 = vpack.c.bf16 %v631_v18, %v627_v17  ;;  %v1282_v30 = vpack.c.bf16 %v633_v21, %v629_v19  ;;  %v664_v17 = vld [vmem:[#allocation8 + $0x770] sm:$0xff]  ;;  %v667_v18 = vld [vmem:[#allocation8 + $0x788] sm:$0xff] }
 0x141   :  { %v671_v19 = vld [vmem:[#allocation8 + $0x7a8] sm:$0xff]  ;;  %v669_v21 = vld [vmem:[#allocation8 + $0x798] sm:$0xff] }
 0x143   :  { %1137 = vmatpush1.bf16.msra.mxu0 %v1136_v36  ;;  %1265 = vmatpush1.bf16.msra.mxu1 %v1264_v37  ;;  %v641_v36 = vld [vmem:[#allocation8 + $0x6b8] sm:$0xff]  ;;  %v1156_v37 = vpack.c.bf16 %v630_v28, %v626_v27  ;;  %v1300_v27 = vpack.c.bf16 %v664_v17, %v660_v16  ;;  %v666_v28 = vld [vmem:[#allocation8 + $0x780] sm:$0xff] }
 0x144   :  { %1139 = vmatprep.subr.bf16.mxu0 %v1138_v40  ;;  %1267 = vmatprep.subr.bf16.mxu1 %v1266_v41  ;;  %v638_v40 = vld [vmem:[#allocation8 + $0x6a0] sm:$0xff]  ;;  %v1158_v41 = vpack.c.bf16 %v639_v34, %v635_v33  ;;  %v1286_v42 = vpack.c.bf16 %v641_v36, %v637_v35  ;;  %v672_v33 = vld [vmem:[#allocation8 + $0x7b0] sm:$0xff]  ;;  %v675_v34 = vld [vmem:[#allocation8 + $0x7c8] sm:$0xff] }
 0x145   :  { %v679_v35 = vld [vmem:[#allocation8 + $0x7e8] sm:$0xff]  ;;  %v677_v36 = vld [vmem:[#allocation8 + $0x7d8] sm:$0xff] }
 0x147   :  { %1141 = vmatpush1.bf16.msra.mxu0 %v1140_v49  ;;  %1269 = vmatpush1.bf16.msra.mxu1 %v1268_v50  ;;  %v649_v49 = vld [vmem:[#allocation8 + $0x6f8] sm:$0xff]  ;;  %v1160_v50 = vpack.c.bf16 %v638_v40, %v634_v39  ;;  %v1304_v39 = vpack.c.bf16 %v672_v33, %v668_v32  ;;  %v674_v40 = vld [vmem:[#allocation8 + $0x7c0] sm:$0xff] }
 0x148   :  { %1143 = vmatprep.subr.bf16.mxu0 %v1142_v53  ;;  %1271 = vmatprep.subr.bf16.mxu1 %v1270_v54  ;;  %v646_v53 = vld [vmem:[#allocation8 + $0x6e0] sm:$0xff]  ;;  %v1162_v54 = vpack.c.bf16 %v647_v46, %v643_v45  ;;  %v1290_v55 = vpack.c.bf16 %v649_v49, %v645_v48  ;;  %v680_v45 = vld [vmem:[#allocation8 + $0x7f0] sm:$0xff]  ;;  %v1180_v46 = vpack.c.bf16 %v678_v43, %v674_v40  ;;  %v424_v49 = vmax.f32 %v1566_v47, 0.0 }
 0x149   :  { %v1308_v48 = vpack.c.bf16 %v680_v45, %v676_v44 }
 0x14b   :  { %1145 = vmatpush1.bf16.msra.mxu0 %v1144_v61  ;;  %1273 = vmatpush1.bf16.msra.mxu1 %v1272_v62  ;;  %v657_v61 = vld [vmem:[#allocation8 + $0x738] sm:$0xff]  ;;  %v1164_v62 = vpack.c.bf16 %v646_v53, %v642_v52  ;;  %v992_v53 = vld [vmem:[%s1593_s7] sm:$0xf] }
 0x14c   :  { %1147 = vmatprep.subr.bf16.mxu0 %v1146_v1  ;;  %1275 = vmatprep.subr.bf16.mxu1 %v1274_v2  ;;  %v654_v1 = vld [vmem:[#allocation8 + $0x720] sm:$0xff]  ;;  %v1166_v2 = vpack.c.bf16 %v655_v59, %v651_v58  ;;  %v1294_v3 = vpack.c.bf16 %v657_v61, %v653_v60  ;;  %v997_v58 = vrot.slane %v992_v53, %v1551_v20 }
 0x14f   :  { %1149 = vmatpush1.bf16.msra.mxu0 %v1148_v9  ;;  %1277 = vmatpush1.bf16.msra.mxu1 %v1276_v10  ;;  %v665_v9 = vld [vmem:[#allocation8 + $0x778] sm:$0xff]  ;;  %v1168_v10 = vpack.c.bf16 %v654_v1, %v650_v0  ;;  %v1001_v0 = vrot.slane %v992_v53, %v1556_v22 }
 0x150   :  { %1151 = vmatprep.subr.bf16.mxu0 %v1150_v13  ;;  %1279 = vmatprep.subr.bf16.mxu1 %v1278_v14  ;;  %v662_v13 = vld [vmem:[#allocation8 + $0x760] sm:$0xff]  ;;  %v1170_v14 = vpack.c.bf16 %v663_v7, %v659_v6  ;;  %v1298_v15 = vpack.c.bf16 %v665_v9, %v661_v8  ;;  %v1009_v6 = vrot.slane %v992_v53, %v1561_v25 }
 0x153   :  { %1153 = vmatpush1.bf16.msra.mxu0 %v1152_v24  ;;  %1281 = vmatpush1.bf16.msra.mxu1 %v1280_v26  ;;  %v673_v24 = vld [vmem:[#allocation8 + $0x7b8] sm:$0xff]  ;;  %v1172_v26 = vpack.c.bf16 %v662_v13, %v658_v12 }
 0x154   :  { %1155 = vmatprep.subr.bf16.mxu0 %v1154_v29  ;;  %1283 = vmatprep.subr.bf16.mxu1 %v1282_v30  ;;  %v670_v29 = vld [vmem:[#allocation8 + $0x7a0] sm:$0xff]  ;;  %v1174_v30 = vpack.c.bf16 %v671_v19, %v667_v18  ;;  %v1302_v31 = vpack.c.bf16 %v673_v24, %v669_v21 }
 0x157   :  { %1157 = vmatpush1.bf16.msra.mxu0 %v1156_v37  ;;  %1285 = vmatpush1.bf16.msra.mxu1 %v1284_v38  ;;  %v681_v37 = vld [vmem:[#allocation8 + $0x7f8] sm:$0xff]  ;;  %v1176_v38 = vpack.c.bf16 %v670_v29, %v666_v28 }
 0x158   :  { %1159 = vmatprep.subr.bf16.mxu0 %v1158_v41  ;;  %1287 = vmatprep.subr.bf16.mxu1 %v1286_v42  ;;  %v1178_v41 = vpack.c.bf16 %v679_v35, %v675_v34  ;;  %v1306_v42 = vpack.c.bf16 %v681_v37, %v677_v36 }
 0x15b   :  { %1161 = vmatpush1.bf16.msra.mxu0 %v1160_v50  ;;  %1289 = vmatpush1.bf16.msra.mxu1 %v1288_v51  ;;  %v682_v50 = vld [vmem:[%s1592_s6] sm:$0xf] }
 0x15c   :  { %1163 = vmatprep.subr.bf16.mxu0 %v1162_v54  ;;  %1291 = vmatprep.subr.bf16.mxu1 %v1290_v55  ;;  %v687_v51 = vrot.slane %v682_v50, %v1551_v20  ;;  %v695_v52 = vrot.slane %v682_v50, %v1558_v23  ;;  %v691_v54 = vrot.slane %v682_v50, %v1556_v22  ;;  %v1053_v22 = vld [vmem:[#allocation2] ss:$0 sm:$0xff] }
 0x15d   :  { %v699_v55 = vrot.slane %v682_v50, %v1561_v25 }
 0x15f   :  { %1165 = vmatpush1.bf16.msra.mxu0 %v1164_v62  ;;  %1293 = vmatpush1.bf16.msra.mxu1 %v1292_v63  ;;  %v1005_v62 = vrot.slane %v992_v53, %v1558_v23 }
 0x160   :  { %1167 = vmatprep.subr.bf16.mxu0 %v1166_v2  ;;  %1295 = vmatprep.subr.bf16.mxu1 %v1294_v3 }
 0x163   :  { %1169 = vmatpush1.bf16.msra.mxu0 %v1168_v10  ;;  %1297 = vmatpush1.bf16.msra.mxu1 %v1296_v11 }
 0x164   :  { %1171 = vmatprep.subr.bf16.mxu0 %v1170_v14  ;;  %1299 = vmatprep.subr.bf16.mxu1 %v1298_v15 }
 0x167   :  { %1173 = vmatpush1.bf16.msra.mxu0 %v1172_v26  ;;  %1301 = vmatpush1.bf16.msra.mxu1 %v1300_v27 }
 0x168   :  { %1175 = vmatprep.subr.bf16.mxu0 %v1174_v30  ;;  %1303 = vmatprep.subr.bf16.mxu1 %v1302_v31 }
 0x16b   :  { %1177 = vmatpush1.bf16.msra.mxu0 %v1176_v38  ;;  %1305 = vmatpush1.bf16.msra.mxu1 %v1304_v39 }
 0x16c   :  { %1179 = vmatprep.subr.bf16.mxu0 %v1178_v41  ;;  %1307 = vmatprep.subr.bf16.mxu1 %v1306_v42 }
 0x16f   :  { %1181 = vmatpush1.bf16.msra.mxu0 %v1180_v46  ;;  %1309 = vmatpush1.bf16.msra.mxu1 %v1308_v48 }
 0x172   :  { %840 = vmatmul.mubr.f32.vlgmr.msra.gmra.mrb[2].mxu0 %v424_v49  ;;  %982 = vmatmul.mubr.f32.vlgmr.msra.gmra.mrb[2].mxu1 %v424_v49 }
 0x245   :  { %v841_v56 = vpop.f32.mrb[2].mxu0  ;;  %v983_v47 = vpop.f32.mrb[2].mxu1 }
 0x246   :  { %v1310_v57 = vadd.f32 %v841_v56, %v687_v51  ;;  %v1312_v59 = vadd.f32 %v983_v47, %v695_v52  ;;  %v843_v60 = vpop.f32.mrb[3].mxu0  ;;  %v985_v61 = vpop.f32.mrb[3].mxu1 }
 0x247   :  { %v1311_v63 = vadd.f32 %v843_v60, %v691_v54  ;;  %v1313_v1 = vadd.f32 %v985_v61, %v699_v55 }
 0x248   :  { %v988_v2 = vmax.f32 %v1310_v57, 0.0  ;;  %v990_v3 = vmax.f32 %v1312_v59, 0.0 }
 0x249   :  { %v989_v4 = vmax.f32 %v1311_v63, 0.0  ;;  %v991_v5 = vmax.f32 %v1313_v1, 0.0 }
 0x24a   :  { %v1014_v7 = vmul.f32 %v997_v58, %v988_v2  ;;  %v1016_v8 = vmul.f32 %v1005_v62, %v990_v3 }
 0x24b   :  { %v1015_v9 = vmul.f32 %v1001_v0, %v989_v4  ;;  %v1017_v10 = vmul.f32 %v1009_v6, %v991_v5 }
 0x24c   :  { %v1019_v20 = vsel %vm1018_vm3, %v1014_v7, 0.0  ;;  %v1022_v13 = vsel %vm1018_vm3, %v1016_v8, 0.0 }
 0x24d   :  { %v1020_v11 = vsel %vm1018_vm3, %v1015_v9, 0.0  ;;  %v1024_v14 = vsel %vm1018_vm3, %v1017_v10, 0.0 }
 0x24e   :  { %v1021_v12 = vadd.f32 %v1020_v11, %v1019_v20 }
 0x250   :  { %v1023_v23 = vadd.f32 %v1022_v13, %v1021_v12 }
 0x252   :  { %v1025_v15 = vadd.f32 %v1024_v14, %v1023_v23 }
 0x254   :  { %1026 = vadd.xlane.f32.xlu0 %v1025_v15 }
 0x2e1   :  { %v1027_v16 = vpop.xlane.xlu0 %1026 }
 0x2e2   :  { %v1035_v17 = vadd.f32 %v1053_v22, %v1027_v16 }
 0x2e4   :  { %1037 = vst.msk [vmem:[%s1595_s9] sm:$0x3] %vm1036_vm4, %v1035_v17 }
 0x2e5   :  { %1042 = vsyncpa [#allocation4], 1 }
 0x2e6   :  { %1043 = vsyncpa [#allocation6], 1 }
 0x2e7   :  { %1044 = vsyncpa [#allocation9], 1 }

</bundles_post_ra>
